<compile_context>
chip_gen: v5e
topology: v5e:2x2
jax: 0.10.0
libtpu: 0.0.40
codegen_flags: <defaults>
</compile_context>

<pallas_src>
import functools

import jax
import jax.numpy as jnp
from jax import lax
from jax.experimental import pallas as pl
from jax.experimental.pallas import tpu as pltpu


def _cdiv(a, b):
    return (a + b - 1) // b


def _round_up(x, m):
    return ((x + m - 1) // m) * m


def _sublane_multiple(dtype):
    # Sub-32-bit dtypes pack along sublanes: bf16 -> 16 rows/vreg, int8/fp8 -> 32.
    return {4: 8, 2: 16, 1: 32}.get(jnp.dtype(dtype).itemsize, 8)


def _dense_kernel(x_ref, w_ref, b_ref, o_ref, *scratch, k_total, tk, use_scratch):
    acc_ref = scratch[0] if use_scratch else o_ref
    k = pl.program_id(2)

    @pl.when(k == 0)
    def _init():
        acc_ref[...] = jnp.zeros_like(acc_ref)

    x = x_ref[...]
    w = w_ref[...]

    if k_total % tk != 0:
        # The last K tile overhangs the array: Pallas edge blocks read undefined
        # data along K, which would corrupt the reduction.  Zero the invalid tail
        # of both operands (cheap VPU selects; all-true on non-final k steps).
        rem = k_total - k * tk
        col = lax.broadcasted_iota(jnp.int32, x.shape, 1)
        x = jnp.where(col < rem, x, jnp.zeros_like(x))
        row = lax.broadcasted_iota(jnp.int32, w.shape, 0)
        w = jnp.where(row < rem, w, jnp.zeros_like(w))

    acc_ref[...] += jnp.dot(x, w, preferred_element_type=jnp.float32)

    @pl.when(k == pl.num_programs(2) - 1)
    def _finalize():
        # Bias added once per output tile in the epilogue (k-independent fetch).
        if use_scratch:
            o_ref[...] = (acc_ref[...] + b_ref[...].astype(jnp.float32)).astype(o_ref.dtype)
        else:
            o_ref[...] = o_ref[...] + b_ref[...].astype(o_ref.dtype)


@functools.partial(jax.jit, static_argnames=("tm", "tn", "tk"))
def dense_forward(x, weight, bias, *, tm=512, tn=1024, tk=1024):
    M, K = x.shape
    K2, N = weight.shape
    assert K == K2, "in_features mismatch"
    assert bias.shape == (N,)

    out_dtype = x.dtype
    sub = _sublane_multiple(x.dtype)

    # Tile clamp: full-extent block when the dim fits (always layout-legal,
    # never overhangs), otherwise a sublane/lane-aligned tile.
    tm = M if M <= tm else max(sub, (tm // sub) * sub)
    tn = N if N <= tn else max(128, (tn // 128) * 128)
    tk = K if K <= tk else max(128, (tk // 128) * 128)

    # Guarantee >=2 parallel output blocks where possible so both v7x
    # TensorCores get work (free up-to-2x for small/decode-style shapes).
    if _cdiv(M, tm) * _cdiv(N, tn) < 2:
        if N >= 2 * 128:
            tn = _round_up(_cdiv(N, 2), 128)
        elif M >= 2 * sub:
            tm = _round_up(_cdiv(M, 2), sub)

    grid = (_cdiv(M, tm), _cdiv(N, tn), _cdiv(K, tk))
    gm, gn, _ = grid

    # f32 outputs accumulate directly into the resident output block; only
    # low-precision outputs need a separate f32 VMEM accumulator.
    use_scratch = out_dtype != jnp.float32
    scratch_shapes = [pltpu.VMEM((tm, tn), jnp.float32)] if use_scratch else []

    bias2d = bias.reshape(1, N)

    # Generation-aware VMEM budget (v5e/v6e: 128 MiB physical, v7x: 64 MiB/TC).
    x_b = jnp.dtype(x.dtype).itemsize
    w_b = jnp.dtype(weight.dtype).itemsize
    b_b = jnp.dtype(bias.dtype).itemsize
    o_b = jnp.dtype(out_dtype).itemsize
    vmem_needed = (2 * (tm * tk * x_b + tk * tn * w_b + tn * b_b)
                   + 2 * tm * tn * o_b
                   + (tm * tn * 4 if use_scratch else 0))
    try:
        vmem_cap = pltpu.get_tpu_info().vmem_capacity_bytes
    except Exception:
        vmem_cap = 64 << 20  # conservative (v7x per-TensorCore physical)
    vmem_ceiling = (vmem_cap * 3) // 4
    vmem_limit = int(min(max(vmem_needed + (4 << 20), 32 << 20), vmem_ceiling))

    # Advisory cost: account for tile-reuse (W streamed gm times, x streamed gn
    # times) and per-operand itemsize.
    cost = pl.CostEstimate(
        flops=2 * M * N * K,
        transcendentals=0,
        bytes_accessed=(M * K * x_b * gn + K * N * w_b * gm
                        + N * b_b * gm + M * N * o_b),
    )

    kernel = functools.partial(_dense_kernel, k_total=K, tk=tk, use_scratch=use_scratch)

    return pl.pallas_call(
        kernel,
        out_shape=jax.ShapeDtypeStruct((M, N), out_dtype),
        grid_spec=pltpu.PrefetchScalarGridSpec(
            num_scalar_prefetch=0,
            grid=grid,
            in_specs=[
                pl.BlockSpec((tm, tk), lambda i, j, k: (i, k)),   # x tile
                pl.BlockSpec((tk, tn), lambda i, j, k: (k, j)),   # weight tile
                pl.BlockSpec((1, tn), lambda i, j, k: (0, j)),    # bias (k-independent)
            ],
            out_specs=pl.BlockSpec((tm, tn), lambda i, j, k: (i, j)),
            scratch_shapes=scratch_shapes,
        ),
        compiler_params=pltpu.CompilerParams(
            dimension_semantics=("parallel", "parallel", "arbitrary"),
            vmem_limit_bytes=vmem_limit,
        ),
        cost_estimate=cost,
    )(x, weight, bias2d)


def init_dense_params(key, in_features, out_features, dtype=jnp.float32):
    """Xavier-uniform weight (torch.nn.init.xavier_uniform_) and zero bias,
    matching the shapes in Dense.__init__."""
    bound = jnp.sqrt(6.0 / (in_features + out_features))
    weight = jax.random.uniform(
        key, (in_features, out_features), dtype=dtype, minval=-bound, maxval=bound
    )
    bias = jnp.zeros((out_features,), dtype=dtype)
    return weight, bias


if __name__ == "__main__":
    # Small shape matching the module's forward (flattened input -> dense).
    batch = 8
    in_features = 32
    out_features = 64

    key = jax.random.PRNGKey(0)
    kx, kw = jax.random.split(key)

    x = jax.random.normal(kx, (batch, in_features), dtype=jnp.float32)
    weight, bias = init_dense_params(kw, in_features, out_features)

    out = jax.block_until_ready(dense_forward(x, weight, bias))
    ref = x @ weight + bias
    assert out.shape == (batch, out_features)
    assert jnp.allclose(out, ref, atol=1e-5, rtol=1e-5)

    # Ragged multi-tile shape with explicit small tiles: exercises M/N edge
    # blocks, the in-kernel K-tail mask, and K-accumulation into o_ref.
    x2 = jax.random.normal(kx, (300, 1000), dtype=jnp.float32)
    w2, b2 = init_dense_params(kw, 1000, 520)
    out2 = jax.block_until_ready(dense_forward(x2, w2, b2, tm=128, tn=256, tk=256))
    ref2 = x2 @ w2 + b2
    assert out2.shape == (300, 520)
    assert jnp.allclose(out2, ref2, atol=1e-3, rtol=1e-4)

    # Same shape with default tiles: exercises full-extent blocks plus the
    # two-TensorCore N-split path.
    out3 = jax.block_until_ready(dense_forward(x2, w2, b2))
    assert jnp.allclose(out3, ref2, atol=1e-3, rtol=1e-4)

    print("KERNEL_OK")
</pallas_src>

<mosaic_0001>
module attributes {stable_mosaic.version = 11 : i64} {
  func.func @_dense_kernel(%arg0: i32, %arg1: i32, %arg2: i32, %arg3: memref<8x32xf32, #tpu.memory_space<vmem>>, %arg4: memref<32x64xf32, #tpu.memory_space<vmem>>, %arg5: memref<1x64xf32, #tpu.memory_space<vmem>>, %arg6: memref<8x64xf32, #tpu.memory_space<vmem>>) attributes {dimension_semantics = [#tpu.dimension_semantics<parallel>, #tpu.dimension_semantics<parallel>, #tpu.dimension_semantics<arbitrary>], iteration_bounds = array<i64: 1, 1, 1>, scalar_prefetch = 0 : i64, scratch_operands = 0 : i64, tpu.core_type = #tpu.core_type<tc>, window_params = [{transform_indices = @transform_0, window_bounds = array<i64: 8, 32>}, {transform_indices = @transform_1, window_bounds = array<i64: 32, 64>}, {transform_indices = @transform_2, window_bounds = array<i64: 1, 64>}, {transform_indices = @transform_3, window_bounds = array<i64: 8, 64>}]} {
    %c0_i32 = arith.constant 0 : i32
    %0 = arith.cmpi eq, %arg2, %c0_i32 : i32
    %1 = arith.extui %0 : i1 to i32
    %c0_i32_0 = arith.constant 0 : i32
    %2 = arith.cmpi ne, %1, %c0_i32_0 : i32
    scf.if %2 {
      %cst_10 = arith.constant 0.000000e+00 : f32
      %12 = vector.broadcast %cst_10 : f32 to vector<8x64xf32>
      %c0_11 = arith.constant 0 : index
      %c0_12 = arith.constant 0 : index
      %13 = vector.load %arg6[%c0_11, %c0_12] : memref<8x64xf32, #tpu.memory_space<vmem>>, vector<8x64xf32>
      tpu.vector_store %arg6[%c0_11, %c0_12], %12 {strides = array<i32>} : memref<8x64xf32, #tpu.memory_space<vmem>>, vector<8x64xf32>,
    } else {
    }
    %c0 = arith.constant 0 : index
    %c0_1 = arith.constant 0 : index
    %3 = vector.load %arg3[%c0, %c0_1] : memref<8x32xf32, #tpu.memory_space<vmem>>, vector<8x32xf32>
    %c0_2 = arith.constant 0 : index
    %c0_3 = arith.constant 0 : index
    %4 = vector.load %arg4[%c0_2, %c0_3] : memref<32x64xf32, #tpu.memory_space<vmem>>, vector<32x64xf32>
    %c0_4 = arith.constant 0 : index
    %c0_5 = arith.constant 0 : index
    %5 = vector.load %arg6[%c0_4, %c0_5] : memref<8x64xf32, #tpu.memory_space<vmem>>, vector<8x64xf32>
    %cst = arith.constant dense<0.000000e+00> : vector<8x64xf32>
    %6 = tpu.matmul %3, %4, %cst {dimension_numbers = #tpu.dot_dimension_numbers<[1], [0], [0], [1], [0, 0, 1, 1], [], []>} : vector<8x32xf32>, vector<32x64xf32>, vector<8x64xf32> -> vector<8x64xf32>
    %7 = arith.addf %5, %6 : vector<8x64xf32>
    %c0_6 = arith.constant 0 : index
    %c0_7 = arith.constant 0 : index
    %8 = vector.load %arg6[%c0_6, %c0_7] : memref<8x64xf32, #tpu.memory_space<vmem>>, vector<8x64xf32>
    tpu.vector_store %arg6[%c0_6, %c0_7], %7 {strides = array<i32>} : memref<8x64xf32, #tpu.memory_space<vmem>>, vector<8x64xf32>,
    %c0_i32_8 = arith.constant 0 : i32
    %9 = arith.cmpi eq, %arg2, %c0_i32_8 : i32
    %10 = arith.extui %9 : i1 to i32
    %c0_i32_9 = arith.constant 0 : i32
    %11 = arith.cmpi ne, %10, %c0_i32_9 : i32
    scf.if %11 {
      %c0_10 = arith.constant 0 : index
      %c0_11 = arith.constant 0 : index
      %12 = vector.load %arg6[%c0_10, %c0_11] : memref<8x64xf32, #tpu.memory_space<vmem>>, vector<8x64xf32>
      %c0_12 = arith.constant 0 : index
      %c0_13 = arith.constant 0 : index
      %13 = vector.load %arg5[%c0_12, %c0_13] : memref<1x64xf32, #tpu.memory_space<vmem>>, vector<1x64xf32>
      %14 = vector.broadcast %13 : vector<1x64xf32> to vector<8x64xf32>
      %15 = arith.addf %12, %14 : vector<8x64xf32>
      %c0_14 = arith.constant 0 : index
      %c0_15 = arith.constant 0 : index
      %16 = vector.load %arg6[%c0_14, %c0_15] : memref<8x64xf32, #tpu.memory_space<vmem>>, vector<8x64xf32>
      tpu.vector_store %arg6[%c0_14, %c0_15], %15 {strides = array<i32>} : memref<8x64xf32, #tpu.memory_space<vmem>>, vector<8x64xf32>,
    } else {
    }
    return
  }
  func.func @transform_0(%arg0: i32, %arg1: i32, %arg2: i32) -> (i32, i32) {
    %c0_i32 = arith.constant 0 : i32
    return %arg0, %arg2 : i32, i32
  }
  func.func @transform_1(%arg0: i32, %arg1: i32, %arg2: i32) -> (i32, i32) {
    %c0_i32 = arith.constant 0 : i32
    return %arg2, %arg1 : i32, i32
  }
  func.func @transform_2(%arg0: i32, %arg1: i32, %arg2: i32) -> (i32, i32) {
    %c0_i32 = arith.constant 0 : i32
    %c0_i32_0 = arith.constant 0 : i32
    return %c0_i32, %arg1 : i32, i32
  }
  func.func @transform_3(%arg0: i32, %arg1: i32, %arg2: i32) -> (i32, i32) {
    %c0_i32 = arith.constant 0 : i32
    return %arg0, %arg1 : i32, i32
  }
}

</mosaic_0001>

<bundles_post_ra>
// kernel: dense_forward.1
= control target key start
LH: loop header
LB: loop body
LE: loop exit
PB: predicated region body
PF: predicated region fallthrough
CT: control target
= control target key end

     0   :  { %8 = vsyncpa [#allocation3], 0  ;;  %s239_s0 = inlined_call_operand.hbm [shape: f32[8,32], index: 0, kind: input, shape index: {}]   ;;  %s240_s1 = inlined_call_operand.hbm [shape: f32[32,64], index: 1, kind: input, shape index: {}]   ;;  %s241_s2 = inlined_call_operand.vmem [shape: f32[1,64], index: 2, kind: input, shape index: {}]   ;;  %s242_s3 = inlined_call_operand.hbm [shape: f32[8,64], index: 3, kind: output, shape index: {}]  }
   0x1   :  { %9 = vsyncpa [#allocation6], 0 }
   0x2   :  { %10 = vsyncpa [#allocation4], 0  ;;  %s16_s14 = sshll.u32 %s239_s0, 4  ;;  %s198_s15 = smov [#allocation2]   ;;  %s17_s14 = int_to_ptr.hbm [resolvable:$true] %s16_s14 }
   0x3   :  { %s18_s16 = sshll.u32 %s198_s15, 4  ;;  %s26_s19 = sshll.u32 %s240_s1, 4  ;;  %s19_s16 = int_to_ptr.vmem [resolvable:$true] %s18_s16  ;;  %s27_s19 = int_to_ptr.hbm [resolvable:$true] %s26_s19 }
   0x4   :  { %21 = dma.hbm_to_vmem [thread:$0]  %s17_s14, 128, %s19_s16, [#allocation3]  }
   0x5   :  { %s199_s20 = smov [#allocation5]   ;;  %s200_s22 = smov 128  }
   0x6   :  { %s28_s21 = sshll.u32 %s199_s20, 4  ;;  %s201_s23 = smov 8   ;;  %s29_s21 = int_to_ptr.vmem [resolvable:$true] %s28_s21 }
   0x7   :  { %34 = dma.hbm_to_vmem [thread:$0]  %s27_s19, 512, %s29_s21, [#allocation6], %s200_s22, %s200_s22, %s201_s23  }
   0x8   :  { %192 = dma.done.wait [#allocation3], 128  }
   0x9   :  { %193 = vsyncadd [#allocation3], 4294967168 }
   0xa   :  { %194 = dma.done.wait [#allocation6], 512  }
   0xb   :  { %195 = vsyncadd [#allocation6], 4294966784  ;;  %vm49_vm0 = vcmask 523264   ;;  %v202_v0 = vmov 0.0   ;;  %v55_v1 = vld [vmem:[#allocation5 + $0x18] sm:$0xff]  ;;  %v54_v2 = vld [vmem:[#allocation5 + $0x10] sm:$0xff] }
   0xc   :  { %50 = vst.msk [vmem:[#allocation7] sm:$0xff] %vm49_vm0, %v202_v0  ;;  %73 = vmatpush.msra.mxu0 %v55_v1  ;;  %v53_v3 = vld [vmem:[#allocation5 + $0x8] sm:$0xff]  ;;  %v52_v4 = vld [vmem:[#allocation5] sm:$0xff]  ;;  %v51_v5 = vld [vmem:[#allocation2] sm:$0xff]  ;;  %vm57_vm1 = vcmask 261120   ;;  %s203_s24 = smov [#allocation7]  }
   0xd   :  { %v119_v9 = vld [vmem:[%s241_s2] ss:$0 sm:$0xff]  ;;  %s99_s25 = sshll.u32 %s203_s24, 4  ;;  %s101_s28 = sshll.u32 %s242_s3, 4  ;;  %s100_s25 = int_to_ptr.vmem [resolvable:$true] %s99_s25  ;;  %s102_s28 = int_to_ptr.hbm [resolvable:$true] %s101_s28 }
   0xe   :  { %74 = vmatpush.msra.mxu0 %v54_v2 }
  0x10   :  { %75 = vmatpush.msra.mxu0 %v53_v3 }
  0x12   :  { %76 = vmatpush.msra.mxu0 %v52_v4 }
  0x13   :  { %112 = vmatmul.msk.f32.vlgmr.msra.gmra.mxu0 %vm57_vm1, %v51_v5  ;;  %v56_v6 = vld [vmem:[#allocation7] sm:$0xff] }
  0x90   :  { %v78_v7 = vpop.f32.mrf.mxu0 }
  0x91   :  { %v81_v8 = vadd.f32 %v78_v7, %v56_v6 }
  0x93   :  { %83 = vst.msk [vmem:[#allocation7] sm:$0xff] %vm49_vm0, %v81_v8 }
  0x9a   :  { %v87_v10 = vld [vmem:[#allocation7] sm:$0xff] }
  0x9b   :  { %v92_v11 = vadd.f32 %v119_v9, %v87_v10 }
  0x9d   :  { %93 = vst.msk [vmem:[#allocation7] sm:$0xff] %vm49_vm0, %v92_v11 }
  0x9e   :  { %104 = dma.vmem_to_hbm [thread:$0]  %s100_s25, 128, %s102_s28, [#allocation4]  }
  0x9f   :  { %196 = dma.done.wait [#allocation4], 128  }
  0xa0   :  { %197 = vsyncadd [#allocation4], 4294967168 }
  0xa1   :  { %109 = vsyncpa [#allocation3], 1 }
  0xa2   :  { %110 = vsyncpa [#allocation6], 1 }
  0xa3   :  { %111 = vsyncpa [#allocation4], 1 }

</bundles_post_ra>
